<compile_context>
chip_gen: v7x
topology: tpu7x:2x2x1
jax: 0.10.0
libtpu: 0.0.40
codegen_flags: <defaults>
</compile_context>

<pallas_src>
import jax
import jax.numpy as jnp
from jax.experimental import pallas as pl
from jax.experimental.pallas import tpu as pltpu

IN_FEATURES = 28 * 28          # 784 (PyTorch spec) -- kept unpadded (divisible by 8 / full dim)
HIDDEN = 400
OUT_FEATURES = 10

HIDDEN_PAD = 512               # 4 * 128
OUT_PAD = 128                  # 1 * 128

TILE_B_MAX = 1024              # ~8.4 MB VMEM footprint at this tile -> fits every gen's scoped default


def _round_up(x, m):
    return ((x + m - 1) // m) * m


def _mlp_kernel(x_ref, w1_ref, b1_ref, w2_ref, b2_ref, o_ref):
    # x_ref:  (TILE_B, 784) f32      w1_ref: (784, 512) bf16   b1_ref: (1, 512) f32
    # w2_ref: (512, 128) bf16        b2_ref: (1, 128) f32      o_ref:  (TILE_B, 128) f32
    x = x_ref[...].astype(jnp.bfloat16)          # cast in-kernel: x read from HBM once, as f32
    # Linear(784 -> 400) + ReLU (Dropout p=0.0 is identity, elided; hidden padded 400 -> 512)
    h = jnp.dot(x, w1_ref[...], preferred_element_type=jnp.float32) + b1_ref[...]
    h = jnp.maximum(h, 0.0).astype(jnp.bfloat16)
    # Linear(400 -> 10)  (padded to 512 -> 128)
    out = jnp.dot(h, w2_ref[...], preferred_element_type=jnp.float32) + b2_ref[...]
    o_ref[...] = out.astype(o_ref.dtype)


def student_model_forward(x_nchw, w1p, b1p, w2p, b2p):
    """x_nchw: (B, 1, 28, 28) float32 -> logits (B, 10) float32.

    w1p/b1p/w2p/b2p are the zero-padded bf16/f32 params from pack_params().
    """
    B = x_nchw.shape[0]
    x_flat = x_nchw.reshape(B, IN_FEATURES).astype(jnp.float32)   # nn.Flatten(), no pad, no bf16 copy

    # Batch tile: multiple of 8 (sublane); split into >=2 grid steps when possible
    # so the "parallel" batch axis can shard over both TensorCores on v7x.
    tile_b = min(TILE_B_MAX, max(8, _round_up(-(-B // 2), 8)))
    b_pad = _round_up(B, tile_b)
    if b_pad != B:
        x_flat = jnp.pad(x_flat, ((0, b_pad - B), (0, 0)))

    grid = (b_pad // tile_b,)

    flops = 2 * b_pad * (IN_FEATURES * HIDDEN_PAD + HIDDEN_PAD * OUT_PAD)
    bytes_accessed = (
        b_pad * IN_FEATURES * 4           # x (f32, read once)
        + IN_FEATURES * HIDDEN_PAD * 2    # w1 (bf16)
        + HIDDEN_PAD * 4                  # b1 (f32)
        + HIDDEN_PAD * OUT_PAD * 2        # w2 (bf16)
        + OUT_PAD * 4                     # b2 (f32)
        + b_pad * OUT_PAD * 4             # out (f32)
    )

    resident = pl.Buffered(1)             # weights/biases never change -> single buffer

    out = pl.pallas_call(
        _mlp_kernel,
        out_shape=jax.ShapeDtypeStruct((b_pad, OUT_PAD), jnp.float32),
        grid_spec=pltpu.PrefetchScalarGridSpec(
            num_scalar_prefetch=0,
            grid=grid,
            in_specs=[
                pl.BlockSpec((tile_b, IN_FEATURES), lambda i: (i, 0)),       # x tile (double-buffered)
                pl.BlockSpec((IN_FEATURES, HIDDEN_PAD), lambda i: (0, 0),
                             pipeline_mode=resident),                        # w1 resident
                pl.BlockSpec((1, HIDDEN_PAD), lambda i: (0, 0),
                             pipeline_mode=resident),                        # b1 resident
                pl.BlockSpec((HIDDEN_PAD, OUT_PAD), lambda i: (0, 0),
                             pipeline_mode=resident),                        # w2 resident
                pl.BlockSpec((1, OUT_PAD), lambda i: (0, 0),
                             pipeline_mode=resident),                        # b2 resident
            ],
            out_specs=pl.BlockSpec((tile_b, OUT_PAD), lambda i: (i, 0)),
        ),
        compiler_params=pltpu.CompilerParams(
            dimension_semantics=("parallel",),   # v7x: shard batch over both TCs
        ),
        cost_estimate=pl.CostEstimate(
            flops=flops, transcendentals=0, bytes_accessed=bytes_accessed),
    )(x_flat, w1p, b1p, w2p, b2p)

    # Strip batch padding and the lane padding of the 10-wide logits.
    return out[:B, :OUT_FEATURES]


def init_params(key):
    """Unpadded f32 params, nn.Linear-style init, stored (in, out) so kernel does x @ W."""
    k1, k2, k3, k4 = jax.random.split(key, 4)
    bound1 = 1.0 / jnp.sqrt(jnp.float32(IN_FEATURES))
    bound2 = 1.0 / jnp.sqrt(jnp.float32(HIDDEN))
    w1 = jax.random.uniform(k1, (IN_FEATURES, HIDDEN), jnp.float32, -bound1, bound1)
    b1 = jax.random.uniform(k2, (1, HIDDEN), jnp.float32, -bound1, bound1)
    w2 = jax.random.uniform(k3, (HIDDEN, OUT_FEATURES), jnp.float32, -bound2, bound2)
    b2 = jax.random.uniform(k4, (1, OUT_FEATURES), jnp.float32, -bound2, bound2)
    return w1, b1, w2, b2


def pack_params(w1, b1, w2, b2):
    """Zero-pad hidden/out to lane-aligned widths and cast weights to bf16 (biases stay f32)."""
    w1p = jnp.zeros((IN_FEATURES, HIDDEN_PAD), jnp.float32).at[:, :HIDDEN].set(w1)
    b1p = jnp.zeros((1, HIDDEN_PAD), jnp.float32).at[:, :HIDDEN].set(b1)
    w2p = jnp.zeros((HIDDEN_PAD, OUT_PAD), jnp.float32).at[:HIDDEN, :OUT_FEATURES].set(w2)
    b2p = jnp.zeros((1, OUT_PAD), jnp.float32).at[:, :OUT_FEATURES].set(b2)
    return w1p.astype(jnp.bfloat16), b1p, w2p.astype(jnp.bfloat16), b2p


if __name__ == "__main__":
    key = jax.random.PRNGKey(0)
    k_x, k_p = jax.random.split(key)

    # MNIST-like input: batch=16 (exercises grid=2 + the parallel batch axis), NCHW.
    B = 16
    x = jax.random.normal(k_x, (B, 1, 28, 28), jnp.float32)
    w1, b1, w2, b2 = init_params(k_p)
    w1p, b1p, w2p, b2p = pack_params(w1, b1, w2, b2)

    out = student_model_forward(x, w1p, b1p, w2p, b2p)
    out = jax.block_until_ready(out)
    assert out.shape == (B, 10)

    # Reference in plain JAX with the same bf16 weights / f32 accumulation.
    x_flat = x.reshape(B, -1)
    xb = x_flat.astype(jnp.bfloat16)
    h_ref = jnp.maximum(
        jnp.dot(xb, w1.astype(jnp.bfloat16), preferred_element_type=jnp.float32) + b1, 0.0)
    ref = jnp.dot(h_ref.astype(jnp.bfloat16), w2.astype(jnp.bfloat16),
                  preferred_element_type=jnp.float32) + b2
    assert jnp.allclose(out, ref, atol=1e-2, rtol=1e-2), (
        float(jnp.max(jnp.abs(out - ref))))

    # Looser sanity check against the full-f32 math (bf16 rounding error only).
    ref_f32 = jnp.maximum(x_flat @ w1 + b1, 0.0) @ w2 + b2
    assert jnp.allclose(out, ref_f32, atol=0.1, rtol=0.1)

    print("KERNEL_OK")
</pallas_src>

<mosaic_0001>
module attributes {stable_mosaic.version = 11 : i64} {
  func.func @_mlp_kernel(%arg0: i32, %arg1: memref<8x784xf32, #tpu.memory_space<vmem>>, %arg2: memref<784x512xbf16, #tpu.memory_space<vmem>>, %arg3: memref<1x512xf32, #tpu.memory_space<vmem>>, %arg4: memref<512x128xbf16, #tpu.memory_space<vmem>>, %arg5: memref<1x128xf32, #tpu.memory_space<vmem>>, %arg6: memref<8x128xf32, #tpu.memory_space<vmem>>) attributes {dimension_semantics = [#tpu.dimension_semantics<parallel>], iteration_bounds = array<i64: 2>, scalar_prefetch = 0 : i64, scratch_operands = 0 : i64, tpu.core_type = #tpu.core_type<tc>, window_params = [{transform_indices = @transform_0, window_bounds = array<i64: 8, 784>}, {pipeline_mode = #tpu.pipeline_mode<synchronous>, transform_indices = @transform_1, window_bounds = array<i64: 784, 512>}, {pipeline_mode = #tpu.pipeline_mode<synchronous>, transform_indices = @transform_2, window_bounds = array<i64: 1, 512>}, {pipeline_mode = #tpu.pipeline_mode<synchronous>, transform_indices = @transform_3, window_bounds = array<i64: 512, 128>}, {pipeline_mode = #tpu.pipeline_mode<synchronous>, transform_indices = @transform_4, window_bounds = array<i64: 1, 128>}, {transform_indices = @transform_5, window_bounds = array<i64: 8, 128>}]} {
    %c0 = arith.constant 0 : index
    %c0_0 = arith.constant 0 : index
    %0 = vector.load %arg1[%c0, %c0_0] : memref<8x784xf32, #tpu.memory_space<vmem>>, vector<8x784xf32>
    %1 = arith.truncf %0 : vector<8x784xf32> to vector<8x784xbf16>
    %c0_1 = arith.constant 0 : index
    %c0_2 = arith.constant 0 : index
    %2 = vector.load %arg2[%c0_1, %c0_2] : memref<784x512xbf16, #tpu.memory_space<vmem>>, vector<784x512xbf16>
    %cst = arith.constant dense<0.000000e+00> : vector<8x512xf32>
    %3 = tpu.matmul %1, %2, %cst {dimension_numbers = #tpu.dot_dimension_numbers<[1], [0], [0], [1], [0, 0, 1, 1], [], []>} : vector<8x784xbf16>, vector<784x512xbf16>, vector<8x512xf32> -> vector<8x512xf32>
    %c0_3 = arith.constant 0 : index
    %c0_4 = arith.constant 0 : index
    %4 = vector.load %arg3[%c0_3, %c0_4] : memref<1x512xf32, #tpu.memory_space<vmem>>, vector<1x512xf32>
    %5 = vector.broadcast %4 : vector<1x512xf32> to vector<8x512xf32>
    %6 = arith.addf %3, %5 : vector<8x512xf32>
    %cst_5 = arith.constant 0.000000e+00 : f32
    %7 = vector.broadcast %cst_5 : f32 to vector<8x512xf32>
    %8 = arith.maximumf %6, %7 : vector<8x512xf32>
    %9 = arith.truncf %8 : vector<8x512xf32> to vector<8x512xbf16>
    %c0_6 = arith.constant 0 : index
    %c0_7 = arith.constant 0 : index
    %10 = vector.load %arg4[%c0_6, %c0_7] : memref<512x128xbf16, #tpu.memory_space<vmem>>, vector<512x128xbf16>
    %cst_8 = arith.constant dense<0.000000e+00> : vector<8x128xf32>
    %11 = tpu.matmul %9, %10, %cst_8 {dimension_numbers = #tpu.dot_dimension_numbers<[1], [0], [0], [1], [0, 0, 1, 1], [], []>} : vector<8x512xbf16>, vector<512x128xbf16>, vector<8x128xf32> -> vector<8x128xf32>
    %c0_9 = arith.constant 0 : index
    %c0_10 = arith.constant 0 : index
    %12 = vector.load %arg5[%c0_9, %c0_10] : memref<1x128xf32, #tpu.memory_space<vmem>>, vector<1x128xf32>
    %13 = vector.broadcast %12 : vector<1x128xf32> to vector<8x128xf32>
    %14 = arith.addf %11, %13 : vector<8x128xf32>
    %c0_11 = arith.constant 0 : index
    %c0_12 = arith.constant 0 : index
    %15 = vector.load %arg6[%c0_11, %c0_12] : memref<8x128xf32, #tpu.memory_space<vmem>>, vector<8x128xf32>
    tpu.vector_store %arg6[%c0_11, %c0_12], %14 {strides = array<i32>} : memref<8x128xf32, #tpu.memory_space<vmem>>, vector<8x128xf32>,
    return
  }
  func.func @transform_0(%arg0: i32) -> (i32, i32) {
    %c0_i32 = arith.constant 0 : i32
    %c0_i32_0 = arith.constant 0 : i32
    return %arg0, %c0_i32 : i32, i32
  }
  func.func @transform_1(%arg0: i32) -> (i32, i32) {
    %c0_i32 = arith.constant 0 : i32
    %c0_i32_0 = arith.constant 0 : i32
    %c0_i32_1 = arith.constant 0 : i32
    return %c0_i32, %c0_i32_0 : i32, i32
  }
  func.func @transform_2(%arg0: i32) -> (i32, i32) {
    %c0_i32 = arith.constant 0 : i32
    %c0_i32_0 = arith.constant 0 : i32
    %c0_i32_1 = arith.constant 0 : i32
    return %c0_i32, %c0_i32_0 : i32, i32
  }
  func.func @transform_3(%arg0: i32) -> (i32, i32) {
    %c0_i32 = arith.constant 0 : i32
    %c0_i32_0 = arith.constant 0 : i32
    %c0_i32_1 = arith.constant 0 : i32
    return %c0_i32, %c0_i32_0 : i32, i32
  }
  func.func @transform_4(%arg0: i32) -> (i32, i32) {
    %c0_i32 = arith.constant 0 : i32
    %c0_i32_0 = arith.constant 0 : i32
    %c0_i32_1 = arith.constant 0 : i32
    return %c0_i32, %c0_i32_0 : i32, i32
  }
  func.func @transform_5(%arg0: i32) -> (i32, i32) {
    %c0_i32 = arith.constant 0 : i32
    %c0_i32_0 = arith.constant 0 : i32
    return %arg0, %c0_i32 : i32, i32
  }
}

</mosaic_0001>

<bundles_post_ra>
// kernel: tpu_custom_call.1
= control target key start
LH: loop header
LB: loop body
LE: loop exit
PB: predicated region body
PF: predicated region fallthrough
CT: control target
= control target key end

     0   :  { %10 = vsyncpa [#allocation3], 0  ;;  %s3430_s0 = inlined_call_operand.hbm [shape: f32[16,784], index: 0, kind: input, shape index: {}]   ;;  %s3431_s1 = inlined_call_operand.hbm [shape: bf16[784,512], index: 1, kind: input, shape index: {}]   ;;  %s3432_s2 = inlined_call_operand.vmem [shape: f32[1,512], index: 2, kind: input, shape index: {}]   ;;  %s3433_s3 = inlined_call_operand.hbm [shape: bf16[512,128], index: 3, kind: input, shape index: {}]   ;;  %s3434_s4 = inlined_call_operand.vmem [shape: f32[1,128], index: 4, kind: input, shape index: {}]   ;;  %s3435_s5 = inlined_call_operand.hbm [shape: f32[16,128], index: 5, kind: output, shape index: {}]  }
   0x1   :  { %12 = vsyncpa [#allocation3 + $0x1], 0 }
   0x2   :  { %13 = vsyncpa [#allocation6], 0 }
   0x3   :  { %14 = vsyncpa [#allocation4], 0 }
   0x4   :  { %16 = vsyncpa [#allocation4 + $0x1], 0  ;;  %s3185_s18 = smov 0   ;;  %s3187_s19 = smov 0  }
   0x5   :  { %s3189_s20 = smov 0   ;;  %s3191_s21 = smov 0  }
   0x6 LB: > { %s3206_s22 = sadd.s32 4294967295, %s3144_s21   ;;  %s2270_s23 = sadd.s32 4294967294, %s3144_s21   ;;  %s3144_s21 = sphi %s3191_s21, %s3455_s21   ;;  %s3140_s20 = sphi %s3189_s20, %s3454_s20   ;;  %s3136_s19 = sphi %s3187_s19, %s3453_s19   ;;  %s3132_s18 = sphi %s3185_s18, %s3452_s18  }
   0x7   : > { %p42_p0 = scmp.ne.s32.totalorder %s3136_s19, %s3132_s18  ;;  %p3436_p1 = scmp.eq.s32.totalorder %s3206_s22, 0 }
   0x8   : > { %p156_p3 = scmp.eq.s32.totalorder %s2270_s23, 1  ;;  %p2271_p5 = scmp.ge.s32.totalorder %s3144_s21, 1 }
   0x9   : > { %p3215_p4 = por %p3436_p1, %p42_p0  ;;  %p163_p7 = scmp.lt.s32.totalorder %s3144_s21, 3 }
   0xa   : > { %p3220_p6 = por %p156_p3, %p42_p0  ;;  %s3146_s27 = smov [#allocation5]  }
   0xb   : > { %s3439_s24 = scalar_select %p3215_p4, 1, 0 }
   0xc   : > { %s3440_s25 = scalar_select %p3220_p6, 1, 0 }
   0xd   : > { %p3225_p8 = pnand %p2271_p5, %p163_p7  ;;  %s175_s28 = sshll.u32 %s3146_s27, 4  ;;  %s3229_s28 = int_to_ptr.vmem [resolvable:$true] %s175_s28 }
   0xe   : > { %s3147_s30 = smov [#allocation7]   ;;  %s2988_s9 = scalar_lea.hbm %s3431_s1, 25088 }
   0xf   : > { %p2602_p9 = pneg %p3225_p8  ;;  %s191_s6 = sshll.u32 %s3147_s30, 4  ;;  %s3240_s6 = int_to_ptr.vmem [resolvable:$true] %s191_s6 }
  0x10   : > { %p2989_p12 = scmp.ne.s32.totalorder %s3431_s1, %s2988_s9  ;;  %p2995_p5 = scmp.lt.u32.totalorder %s2988_s9, %s3431_s1 }
  0x11   : > { %p3236_p11 = pnand %p2602_p9, %p3436_p1 }
  0x13   : > { %p2990_p13 = pneg %p3236_p11 }
  0x15   : > { %p2991_p0 = pnand %p2990_p13, %p2989_p12 }
  0x17   : > { %p2992_p3 = pneg %p2991_p0 }
  0x19   : > { %p2997_p7 = pnand %p2995_p5, %p2992_p3 }
  0x1b   : > { %3000 = shalt.err (!%p2997_p7)
}
  0x1c   : > { %s3001_s14 = scalar_lea.vmem %s3229_s28, 25088  ;;  %p3009_p2 = scmp.lt.s32.totalorder %s3229_s28, %s3229_s28 }
  0x1d   : > { %p3002_p9 = scmp.ne.s32.totalorder %s3229_s28, %s3001_s14  ;;  %p3010_p12 = scmp.lt.s32.totalorder %s3001_s14, %s3001_s14 }
  0x1f   : > { %p3004_p10 = pnand %p3002_p9, %p2990_p13  ;;  %p3011_p0 = por %p3010_p12, %p3009_p2 }
  0x21   : > { %p3005_p1 = pneg %p3004_p10 }
  0x23   : > { %p3012_p6 = pnand %p3011_p0, %p3005_p1 }
  0x25   : > { %3015 = shalt.err (!%p3012_p6)
}
  0x26   : > { %s3148_s15 = smov 256   ;;  %s3149_s16 = smov 16  }
  0x27   : > { %2605 = dma.hbm_to_vmem [thread:$0]  (!%p3236_p11), %s3431_s1, 25088, %s3229_s28, [#allocation6], %s3148_s15, %s3148_s15, %s3149_s16  }
  0x28   : > { %s3016_s7 = scalar_lea.hbm %s3433_s3, 4096 }
  0x29   : > { %p3017_p2 = scmp.ne.s32.totalorder %s3433_s3, %s3016_s7  ;;  %p3023_p10 = scmp.lt.u32.totalorder %s3016_s7, %s3433_s3 }
  0x2b   : > { %p3019_p1 = pnand %p3017_p2, %p2990_p13 }
  0x2d   : > { %p3020_p6 = pneg %p3019_p1 }
  0x2f   : > { %p3025_p3 = pnand %p3023_p10, %p3020_p6 }
  0x31   : > { %3028 = shalt.err (!%p3025_p3)
}
  0x32   : > { %s3029_s28 = scalar_lea.vmem %s3240_s6, 4096  ;;  %p3037_p12 = scmp.lt.s32.totalorder %s3240_s6, %s3240_s6 }
  0x33   : > { %p3030_p5 = scmp.ne.s32.totalorder %s3240_s6, %s3029_s28  ;;  %p3038_p0 = scmp.lt.s32.totalorder %s3029_s28, %s3029_s28 }
  0x35   : > { %p3032_p7 = pnand %p3030_p5, %p2990_p13  ;;  %p3039_p2 = por %p3038_p0, %p3037_p12 }
  0x37   : > { %p3033_p9 = pneg %p3032_p7 }
  0x39   : > { %p3040_p1 = pnand %p3039_p2, %p3033_p9 }
  0x3b   : > { %3043 = shalt.err (!%p3040_p1)
}
  0x3c   : > { %s3150_s12 = smov 64   ;;  %s3151_s13 = smov 4  }
  0x3d   : > { %2608 = dma.hbm_to_vmem [thread:$0]  (!%p3236_p11), %s3433_s3, 4096, %s3240_s6, [#allocation6], %s3150_s12, %s3150_s12, %s3151_s13  }
  0x3e   : > { %s3295_s16 = sadd.s32 1, %s3144_s21   ;;  %s29_s23 = sadd.s32 1, %s3140_s20 }
  0x3f   : > { %s26_s17 = ssub.s32 %s3144_s21, %s3295_s16  ;;  %p36_p6 = scmp.ne.s32.totalorder %s3140_s20, %s3136_s19 }
  0x40   : > { %p27_p13 = scmp.eq.s32.totalorder %s26_s17, 0  ;;  %p37_p10 = scmp.eq.s32.totalorder %s3144_s21, 0 }
  0x41   : > { %p3443_p5 = scmp.eq.s32.totalorder %s3206_s22, 1  ;;  %p2619_p9 = scmp.lt.s32.totalorder %s3144_s21, 2 }
  0x42   : > { %s3304_s27 = scalar_select %p27_p13, %s3140_s20, %s29_s23  }
  0x43   : > { %p38_p3 = por %p37_p10, %p36_p6  ;;  %p3308_p7 = por %p3443_p5, %p36_p6 }
  0x44   : > { %s208_s29 = sand.u32 1, %s3140_s20   ;;  %s2588_s6 = smul.u32 896, %s3144_s21 }
  0x45   : > { %s3444_s30 = scalar_select %p3308_p7, 1, 0 }
  0x46   : > { %s2587_s7 = smul.u32 56, %s208_s29  ;;  %p3315_p11 = pnand %p2619_p9, %p38_p3 }
  0x47   : > { %s3322_s11 = scalar_lea.hbm %s3430_s0, %s2588_s6  ;;  %s209_s13 = scalar_lea.sflag [#allocation3], %s208_s29 }
  0x48   : > { %s212_s28 = scalar_lea.vmem [#allocation2], %s2587_s7  ;;  %s3044_s14 = scalar_lea.hbm %s3322_s11, 896 }
  0x49   : > { %s220_s12 = sshll.u32 %s212_s28, 4  ;;  %p3045_p12 = scmp.ne.s32.totalorder %s3322_s11, %s3044_s14  ;;  %s3324_s12 = int_to_ptr.vmem [resolvable:$true] %s220_s12 }
  0x4a   : > { %p3046_p0 = pneg %p3315_p11  ;;  %s3049_s23 = scalar_lea.hbm %s3430_s0, 1792 }
  0x4b   : > { %p3050_p13 = scmp.lt.u32.totalorder %s3322_s11, %s3430_s0  ;;  %p3051_p6 = scmp.lt.u32.totalorder %s3049_s23, %s3044_s14 }
  0x4c   : > { %p3047_p2 = pnand %p3046_p0, %p3045_p12  ;;  %p3053_p3 = scmp.lt.u32.totalorder %s3044_s14, %s3322_s11 }
  0x4d   : > { %p3052_p10 = por %p3051_p6, %p3050_p13 }
  0x4e   : > { %p3048_p1 = pneg %p3047_p2 }
  0x4f   : > { %p3054_p5 = por %p3053_p3, %p3052_p10 }
  0x51   : > { %p3055_p9 = pnand %p3054_p5, %p3048_p1 }
  0x53   : > { %3058 = shalt.err (!%p3055_p9)
}
  0x54   : > { %s3059_s29 = scalar_lea.vmem %s3324_s12, 896  ;;  %s3152_s7 = smov [#allocation2]  }
  0x55   : > { %p3060_p12 = scmp.ne.s32.totalorder %s3324_s12, %s3059_s29  ;;  %s3064_s10 = sshll.u32 %s3152_s7, 4  ;;  %s3065_s10 = int_to_ptr.vmem [resolvable:$false] %s3064_s10 }
  0x56   : > { %s3066_s28 = scalar_lea.vmem %s3065_s10, 1792  ;;  %p3067_p4 = scmp.lt.s32.totalorder %s3324_s12, %s3065_s10 }
  0x57   : > { %p3062_p2 = pnand %p3060_p12, %p3046_p0  ;;  %p3068_p13 = scmp.lt.s32.totalorder %s3066_s28, %s3059_s29 }
  0x59   : > { %p3063_p7 = pneg %p3062_p2  ;;  %p3069_p6 = por %p3068_p13, %p3067_p4 }
  0x5b   : > { %p3070_p10 = pnand %p3069_p6, %p3063_p7 }
  0x5d   : > { %3073 = shalt.err (!%p3070_p10)
}
  0x5e   : > { %2612 = dma.hbm_to_vmem [thread:$0]  (!%p3315_p11), %s3322_s11, 896, %s3324_s12, %s209_s13  }
  0x5f   : > { %229 = sbr.rel (%p3225_p8) target bundleno = 764 (0x2fc), region = 40  ;;  %s3354_s14 = sand.u32 (!%p3225_p8), 1, %s3136_s19  }
  0x60   : > { %s2589_s15 = smul.u32 (!%p3225_p8), 56, %s3354_s14  ;;  %s232_s17 = scalar_lea.sflag (!%p3225_p8), [#allocation3], %s3354_s14 }
  0x61   : > { %p3446_p4 = scmp.ne.s32.totalorder (!%p3225_p8), %s3439_s24, 0 }
  0x62   : > { %s3358_s23 = scalar_lea.vmem (!%p3225_p8), [#allocation2], %s2589_s15 }
  0x66   : > { %3119 = dma.done.wait (%p3446_p4), %s232_s17, 896  }
  0x67   : > { %3121 = vsyncadd (%p3446_p4), %s232_s17, 4294966400  ;;  %p3447_p7 = scmp.eq.s32.totalorder %s3206_s22, 0 }
  0x69   : > { %3123 = dma.done.wait (%p3447_p7), [#allocation6], 29184   ;;  %p3448_p8 = pmov %p3447_p7 }
  0x6a   : > { %v2662_v0 = vld [vmem:[#allocation5 + $0x4] ss:$16 sps:$4 sm:$0xff]   ;;  %v2664_v1 = vld [vmem:[#allocation5 + $0xc] ss:$16 sps:$4 sm:$0xff]   ;;  %v2666_v2 = vld [vmem:[#allocation5] ss:$16 sps:$4 sm:$0xff]  }
  0x6b   : > { %3125 = vsyncadd (%p3448_p8), [#allocation6], 4294938112  ;;  %1487 = vmatprep.subr.bf16.mxu0 %v2662_v0  ;;  %v2667_v3 = vld [vmem:[#allocation5 + $0x8] ss:$16 sps:$4 sm:$0xff]   ;;  %1651 = vmatprep.subr.bf16.mxu1 %v2664_v1  ;;  %v2668_v4 = vld [vmem:[#allocation5 + $0x24] ss:$16 sps:$4 sm:$0xff]  }
  0x6c   : > { %1488 = vmatpush1.bf16.msra.mxu0 %v2666_v2  ;;  %1652 = vmatpush1.bf16.msra.mxu1 %v2667_v3  ;;  %v2670_v5 = vld [vmem:[#allocation5 + $0x2c] ss:$16 sps:$4 sm:$0xff]   ;;  %v2672_v6 = vld [vmem:[#allocation5 + $0x20] ss:$16 sps:$4 sm:$0xff]   ;;  %v2673_v7 = vld [vmem:[#allocation5 + $0x28] ss:$16 sps:$4 sm:$0xff]  }
  0x6d   : > { %1489 = vmatprep.subr.bf16.mxu0 %v2668_v4  ;;  %1653 = vmatprep.subr.bf16.mxu1 %v2670_v5  ;;  %v2674_v8 = vld [vmem:[#allocation5 + $0x44] ss:$16 sps:$4 sm:$0xff]   ;;  %v2676_v9 = vld [vmem:[#allocation5 + $0x4c] ss:$16 sps:$4 sm:$0xff]   ;;  %v2678_v10 = vld [vmem:[#allocation5 + $0x40] ss:$16 sps:$4 sm:$0xff]  }
  0x6e   : > { %v2679_v11 = vld [vmem:[#allocation5 + $0x48] ss:$16 sps:$4 sm:$0xff]   ;;  %v2680_v12 = vld [vmem:[#allocation5 + $0x64] ss:$16 sps:$4 sm:$0xff]   ;;  %v2682_v13 = vld [vmem:[#allocation5 + $0x6c] ss:$16 sps:$4 sm:$0xff]  }
  0x6f   : > { %v2684_v14 = vld [vmem:[#allocation5 + $0x60] ss:$16 sps:$4 sm:$0xff]   ;;  %v2685_v15 = vld [vmem:[#allocation5 + $0x68] ss:$16 sps:$4 sm:$0xff]   ;;  %v2686_v16 = vld [vmem:[#allocation5 + $0x84] ss:$16 sps:$4 sm:$0xff]  }
  0x70   : > { %1490 = vmatpush1.bf16.msra.mxu0 %v2672_v6  ;;  %1654 = vmatpush1.bf16.msra.mxu1 %v2673_v7  ;;  %v2688_v17 = vld [vmem:[#allocation5 + $0x8c] ss:$16 sps:$4 sm:$0xff]   ;;  %v2690_v18 = vld [vmem:[#allocation5 + $0x80] ss:$16 sps:$4 sm:$0xff]   ;;  %v2691_v19 = vld [vmem:[#allocation5 + $0x88] ss:$16 sps:$4 sm:$0xff]  }
  0x71   : > { %1491 = vmatprep.subr.bf16.mxu0 %v2674_v8  ;;  %1655 = vmatprep.subr.bf16.mxu1 %v2676_v9  ;;  %v2692_v20 = vld [vmem:[#allocation5 + $0xa4] ss:$16 sps:$4 sm:$0xff]   ;;  %v2694_v21 = vld [vmem:[#allocation5 + $0xac] ss:$16 sps:$4 sm:$0xff]   ;;  %v2696_v22 = vld [vmem:[#allocation5 + $0xa0] ss:$16 sps:$4 sm:$0xff]  }
  0x72   : > { %v2697_v23 = vld [vmem:[#allocation5 + $0xa8] ss:$16 sps:$4 sm:$0xff]   ;;  %v2698_v24 = vld [vmem:[#allocation5 + $0xc4] ss:$16 sps:$4 sm:$0xff]   ;;  %v2700_v25 = vld [vmem:[#allocation5 + $0xcc] ss:$16 sps:$4 sm:$0xff]  }
  0x73   : > { %v2702_v26 = vld [vmem:[#allocation5 + $0xc0] ss:$16 sps:$4 sm:$0xff]   ;;  %v2703_v27 = vld [vmem:[#allocation5 + $0xc8] ss:$16 sps:$4 sm:$0xff]   ;;  %v2704_v28 = vld [vmem:[#allocation5 + $0xe4] ss:$16 sps:$4 sm:$0xff]  }
  0x74   : > { %1492 = vmatpush1.bf16.msra.mxu0 %v2678_v10  ;;  %1656 = vmatpush1.bf16.msra.mxu1 %v2679_v11  ;;  %v2706_v29 = vld [vmem:[#allocation5 + $0xec] ss:$16 sps:$4 sm:$0xff]   ;;  %v2708_v30 = vld [vmem:[#allocation5 + $0xe0] ss:$16 sps:$4 sm:$0xff]   ;;  %v2709_v31 = vld [vmem:[#allocation5 + $0xe8] ss:$16 sps:$4 sm:$0xff]  }
  0x75   : > { %1493 = vmatprep.subr.bf16.mxu0 %v2680_v12  ;;  %1657 = vmatprep.subr.bf16.mxu1 %v2682_v13  ;;  %v2710_v32 = vld [vmem:[#allocation5 + $0x104] ss:$16 sps:$4 sm:$0xff]   ;;  %v2712_v33 = vld [vmem:[#allocation5 + $0x10c] ss:$16 sps:$4 sm:$0xff]   ;;  %v2714_v34 = vld [vmem:[#allocation5 + $0x100] ss:$16 sps:$4 sm:$0xff]  }
  0x76   : > { %v2715_v35 = vld [vmem:[#allocation5 + $0x108] ss:$16 sps:$4 sm:$0xff]   ;;  %v2716_v36 = vld [vmem:[#allocation5 + $0x124] ss:$16 sps:$4 sm:$0xff]   ;;  %v2718_v37 = vld [vmem:[#allocation5 + $0x12c] ss:$16 sps:$4 sm:$0xff]  }
  0x77   : > { %v2720_v38 = vld [vmem:[#allocation5 + $0x120] ss:$16 sps:$4 sm:$0xff]   ;;  %v2721_v39 = vld [vmem:[#allocation5 + $0x128] ss:$16 sps:$4 sm:$0xff]   ;;  %v2722_v40 = vld [vmem:[#allocation5 + $0x144] ss:$16 sps:$4 sm:$0xff]  }
  0x78   : > { %1494 = vmatpush1.bf16.msra.mxu0 %v2684_v14  ;;  %1658 = vmatpush1.bf16.msra.mxu1 %v2685_v15  ;;  %v2724_v41 = vld [vmem:[#allocation5 + $0x14c] ss:$16 sps:$4 sm:$0xff]   ;;  %v2726_v42 = vld [vmem:[#allocation5 + $0x140] ss:$16 sps:$4 sm:$0xff]   ;;  %v2727_v43 = vld [vmem:[#allocation5 + $0x148] ss:$16 sps:$4 sm:$0xff]  }
  0x79   : > { %1495 = vmatprep.subr.bf16.mxu0 %v2686_v16  ;;  %1659 = vmatprep.subr.bf16.mxu1 %v2688_v17  ;;  %v2728_v44 = vld [vmem:[#allocation5 + $0x164] ss:$16 sps:$4 sm:$0xff]   ;;  %v2730_v45 = vld [vmem:[#allocation5 + $0x16c] ss:$16 sps:$4 sm:$0xff]   ;;  %v2732_v47 = vld [vmem:[#allocation5 + $0x160] ss:$16 sps:$4 sm:$0xff]  }
  0x7a   : > { %v272_v46 = vld [vmem:[%s3358_s23 + $0x8] sm:$0xff]  ;;  %v271_v2 = vld [vmem:[%s3358_s23] sm:$0xff]  ;;  %vm1483_vm0 = vcmask 130048   ;;  %s2279_s8 = sshll.u32 %s3354_s14, 3  ;;  %s2512_s13 = sshll.u32 %s3206_s22, 7 }
  0x7b   : > { %v279_v48 = vpack.c.bf16 %v272_v46, %v272_v46  ;;  %v2733_v49 = vld [vmem:[#allocation5 + $0x168] ss:$16 sps:$4 sm:$0xff]   ;;  %v2734_v50 = vld [vmem:[#allocation5 + $0x184] ss:$16 sps:$4 sm:$0xff]   ;;  %v2736_v51 = vld [vmem:[#allocation5 + $0x18c] ss:$16 sps:$4 sm:$0xff]   ;;  %v278_v5 = vpack.c.bf16 %v271_v2, %v271_v2  ;;  %s3386_s10 = scalar_lea.hbm %s3435_s5, %s2512_s13 }
  0x7c   : > { %1496 = vmatpush1.bf16.msra.mxu0 %v2690_v18  ;;  %1660 = vmatpush1.bf16.msra.mxu1 %v2691_v19  ;;  %v2738_v52 = vld [vmem:[#allocation5 + $0x180] ss:$16 sps:$4 sm:$0xff]   ;;  %v2739_v53 = vld [vmem:[#allocation5 + $0x188] ss:$16 sps:$4 sm:$0xff]   ;;  %v2740_v54 = vld [vmem:[#allocation5 + $0x1a4] ss:$16 sps:$4 sm:$0xff]  }
  0x7d   : > { %1497 = vmatprep.subr.bf16.mxu0 %v2692_v20  ;;  %1661 = vmatprep.subr.bf16.mxu1 %v2694_v21  ;;  %v2742_v55 = vld [vmem:[#allocation5 + $0x1ac] ss:$16 sps:$4 sm:$0xff]   ;;  %v2744_v56 = vld [vmem:[#allocation5 + $0x1a0] ss:$16 sps:$4 sm:$0xff]   ;;  %v2745_v57 = vld [vmem:[#allocation5 + $0x1a8] ss:$16 sps:$4 sm:$0xff]  }
  0x7e   : > { %1519 = vmatprep.mubr.bf16.mxu0 %v279_v48  ;;  %1683 = vmatprep.mubr.bf16.mxu1 %v279_v48  ;;  %v2746_v58 = vld [vmem:[#allocation5 + $0x1c4] ss:$16 sps:$4 sm:$0xff]   ;;  %v2748_v59 = vld [vmem:[#allocation5 + $0x1cc] ss:$16 sps:$4 sm:$0xff]   ;;  %v2750_v60 = vld [vmem:[#allocation5 + $0x1c0] ss:$16 sps:$4 sm:$0xff]  }
  0x7f   : > { %v2751_v61 = vld [vmem:[#allocation5 + $0x1c8] ss:$16 sps:$4 sm:$0xff]   ;;  %v2752_v62 = vld [vmem:[#allocation5 + $0x1e4] ss:$16 sps:$4 sm:$0xff]   ;;  %v2754_v63 = vld [vmem:[#allocation5 + $0x1ec] ss:$16 sps:$4 sm:$0xff]  }
  0x80   : > { %1498 = vmatpush1.bf16.msra.mxu0 %v2696_v22  ;;  %1662 = vmatpush1.bf16.msra.mxu1 %v2697_v23  ;;  %v2756_v0 = vld [vmem:[#allocation5 + $0x1e0] ss:$16 sps:$4 sm:$0xff]   ;;  %v2757_v1 = vld [vmem:[#allocation5 + $0x1e8] ss:$16 sps:$4 sm:$0xff]   ;;  %v2760_v3 = vld [vmem:[#allocation5 + $0x204] ss:$16 sps:$4 sm:$0xff]  }
  0x81   : > { %1499 = vmatprep.subr.bf16.mxu0 %v2698_v24  ;;  %1663 = vmatprep.subr.bf16.mxu1 %v2700_v25  ;;  %v2763_v4 = vld [vmem:[#allocation5 + $0x20c] ss:$16 sps:$4 sm:$0xff]   ;;  %v2758_v6 = vld [vmem:[#allocation5 + $0x200] ss:$16 sps:$4 sm:$0xff]   ;;  %v2761_v7 = vld [vmem:[#allocation5 + $0x208] ss:$16 sps:$4 sm:$0xff]  }
  0x82   : > { %v2766_v8 = vld [vmem:[#allocation5 + $0x224] ss:$16 sps:$4 sm:$0xff]   ;;  %v2769_v9 = vld [vmem:[#allocation5 + $0x22c] ss:$16 sps:$4 sm:$0xff]   ;;  %v2764_v10 = vld [vmem:[#allocation5 + $0x220] ss:$16 sps:$4 sm:$0xff]  }
  0x83   : > { %v2767_v11 = vld [vmem:[#allocation5 + $0x228] ss:$16 sps:$4 sm:$0xff]   ;;  %v2772_v12 = vld [vmem:[#allocation5 + $0x244] ss:$16 sps:$4 sm:$0xff]   ;;  %v2775_v13 = vld [vmem:[#allocation5 + $0x24c] ss:$16 sps:$4 sm:$0xff]  }
  0x84   : > { %1500 = vmatpush1.bf16.msra.mxu0 %v2702_v26  ;;  %1664 = vmatpush1.bf16.msra.mxu1 %v2703_v27  ;;  %v2770_v14 = vld [vmem:[#allocation5 + $0x240] ss:$16 sps:$4 sm:$0xff]   ;;  %v2773_v15 = vld [vmem:[#allocation5 + $0x248] ss:$16 sps:$4 sm:$0xff]   ;;  %v2778_v16 = vld [vmem:[#allocation5 + $0x264] ss:$16 sps:$4 sm:$0xff]  }
  0x85   : > { %1501 = vmatprep.subr.bf16.mxu0 %v2704_v28  ;;  %1665 = vmatprep.subr.bf16.mxu1 %v2706_v29  ;;  %v2781_v17 = vld [vmem:[#allocation5 + $0x26c] ss:$16 sps:$4 sm:$0xff]   ;;  %v2776_v18 = vld [vmem:[#allocation5 + $0x260] ss:$16 sps:$4 sm:$0xff]   ;;  %v2779_v19 = vld [vmem:[#allocation5 + $0x268] ss:$16 sps:$4 sm:$0xff]  }
  0x86   : > { %v2784_v20 = vld [vmem:[#allocation5 + $0x284] ss:$16 sps:$4 sm:$0xff]   ;;  %v2787_v21 = vld [vmem:[#allocation5 + $0x28c] ss:$16 sps:$4 sm:$0xff]   ;;  %v2782_v22 = vld [vmem:[#allocation5 + $0x280] ss:$16 sps:$4 sm:$0xff]  }
  0x87   : > { %v2785_v23 = vld [vmem:[#allocation5 + $0x288] ss:$16 sps:$4 sm:$0xff]   ;;  %v2790_v24 = vld [vmem:[#allocation5 + $0x2a4] ss:$16 sps:$4 sm:$0xff]   ;;  %v2793_v25 = vld [vmem:[#allocation5 + $0x2ac] ss:$16 sps:$4 sm:$0xff]  }
  0x88   : > { %1502 = vmatpush1.bf16.msra.mxu0 %v2708_v30  ;;  %1666 = vmatpush1.bf16.msra.mxu1 %v2709_v31  ;;  %v2788_v26 = vld [vmem:[#allocation5 + $0x2a0] ss:$16 sps:$4 sm:$0xff]   ;;  %v2791_v27 = vld [vmem:[#allocation5 + $0x2a8] ss:$16 sps:$4 sm:$0xff]   ;;  %v2796_v28 = vld [vmem:[#allocation5 + $0x2c4] ss:$16 sps:$4 sm:$0xff]  }
  0x89   : > { %1503 = vmatprep.subr.bf16.mxu0 %v2710_v32  ;;  %1667 = vmatprep.subr.bf16.mxu1 %v2712_v33  ;;  %v2799_v29 = vld [vmem:[#allocation5 + $0x2cc] ss:$16 sps:$4 sm:$0xff]   ;;  %v2794_v31 = vld [vmem:[#allocation5 + $0x2c0] ss:$16 sps:$4 sm:$0xff]   ;;  %v2797_v33 = vld [vmem:[#allocation5 + $0x2c8] ss:$16 sps:$4 sm:$0xff]  }
  0x8a   : > { %v274_v30 = vld [vmem:[%s3358_s23 + $0x18] sm:$0xff]  ;;  %s269_s6 = scalar_lea.vmem [#allocation8], %s2279_s8  ;;  %s2168_s28 = scalar_lea.sflag [#allocation4], %s3354_s14 }
  0x8b   : > { %v281_v32 = vpack.c.bf16 %v274_v30, %v274_v30  ;;  %v2820_v46 = vld [vmem:[#allocation5 + $0x344] ss:$16 sps:$4 sm:$0xff]   ;;  %v2818_v48 = vld [vmem:[#allocation5 + $0x340] ss:$16 sps:$4 sm:$0xff]   ;;  %s2181_s9 = sshll.u32 %s269_s6, 4  ;;  %p3449_p0 = scmp.ne.s32.totalorder %s3444_s30, 0  ;;  %s3388_s9 = int_to_ptr.vmem [resolvable:$true] %s2181_s9 }
  0x8c   : > { %1504 = vmatpush1.bf16.msra.mxu0 %v2714_v34  ;;  %1668 = vmatpush1.bf16.msra.mxu1 %v2715_v35  ;;  %v2802_v34 = vld [vmem:[#allocation5 + $0x2e4] ss:$16 sps:$4 sm:$0xff]   ;;  %v2805_v35 = vld [vmem:[#allocation5 + $0x2ec] ss:$16 sps:$4 sm:$0xff]   ;;  %s3074_s15 = scalar_lea.vmem %s3388_s9, 128  ;;  %s3154_s22 = smov [#allocation8]  }
  0x8d   : > { %1505 = vmatprep.subr.bf16.mxu0 %v2716_v36  ;;  %1669 = vmatprep.subr.bf16.mxu1 %v2718_v37  ;;  %v2800_v36 = vld [vmem:[#allocation5 + $0x2e0] ss:$16 sps:$4 sm:$0xff]   ;;  %v2803_v37 = vld [vmem:[#allocation5 + $0x2e8] ss:$16 sps:$4 sm:$0xff]   ;;  %v2850_v2 = vld [vmem:[#allocation5 + $0x3e4] ss:$16 sps:$4 sm:$0xff]   ;;  %p3075_p11 = scmp.ne.s32.totalorder %s3388_s9, %s3074_s15 }
  0x8e   : > { %v2886_v30 = vld [vmem:[#allocation5 + $0x4a4] ss:$16 sps:$4 sm:$0xff]   ;;  %s3078_s17 = sshll.u32 %s3154_s22, 4  ;;  %s3079_s17 = int_to_ptr.vmem [resolvable:$false] %s3078_s17 }
  0x8f   : > { %p3076_p1 = pnand %p3075_p11, %p3449_p0  ;;  %p3081_p5 = scmp.lt.s32.totalorder %s3388_s9, %s3079_s17 }
  0x90   : > { %1506 = vmatpush1.bf16.msra.mxu0 %v2720_v38  ;;  %1670 = vmatpush1.bf16.msra.mxu1 %v2721_v39  ;;  %v2808_v38 = vld [vmem:[#allocation5 + $0x304] ss:$16 sps:$4 sm:$0xff]   ;;  %v2811_v39 = vld [vmem:[#allocation5 + $0x30c] ss:$16 sps:$4 sm:$0xff]  }
  0x91   : > { %1507 = vmatprep.subr.bf16.mxu0 %v2722_v40  ;;  %1671 = vmatprep.subr.bf16.mxu1 %v2724_v41  ;;  %v2806_v40 = vld [vmem:[#allocation5 + $0x300] ss:$16 sps:$4 sm:$0xff]   ;;  %v2809_v41 = vld [vmem:[#allocation5 + $0x308] ss:$16 sps:$4 sm:$0xff]   ;;  %p3077_p3 = pneg %p3076_p1 }
  0x94   : > { %1508 = vmatpush1.bf16.msra.mxu0 %v2726_v42  ;;  %1672 = vmatpush1.bf16.msra.mxu1 %v2727_v43  ;;  %v2814_v42 = vld [vmem:[#allocation5 + $0x324] ss:$16 sps:$4 sm:$0xff]   ;;  %v2817_v43 = vld [vmem:[#allocation5 + $0x32c] ss:$16 sps:$4 sm:$0xff]  }
  0x95   : > { %1509 = vmatprep.subr.bf16.mxu0 %v2728_v44  ;;  %1673 = vmatprep.subr.bf16.mxu1 %v2730_v45  ;;  %v2812_v44 = vld [vmem:[#allocation5 + $0x320] ss:$16 sps:$4 sm:$0xff]   ;;  %v2815_v45 = vld [vmem:[#allocation5 + $0x328] ss:$16 sps:$4 sm:$0xff]  }
  0x98   : > { %1510 = vmatpush1.bf16.msra.mxu0 %v2732_v47  ;;  %1674 = vmatpush1.bf16.msra.mxu1 %v2733_v49  ;;  %v2823_v47 = vld [vmem:[#allocation5 + $0x34c] ss:$16 sps:$4 sm:$0xff]   ;;  %v2821_v49 = vld [vmem:[#allocation5 + $0x348] ss:$16 sps:$4 sm:$0xff]  }
  0x99   : > { %1511 = vmatprep.subr.bf16.mxu0 %v2734_v50  ;;  %1675 = vmatprep.subr.bf16.mxu1 %v2736_v51  ;;  %v2826_v50 = vld [vmem:[#allocation5 + $0x364] ss:$16 sps:$4 sm:$0xff]   ;;  %v2829_v51 = vld [vmem:[#allocation5 + $0x36c] ss:$16 sps:$4 sm:$0xff]  }
  0x9c   : > { %1512 = vmatpush1.bf16.msra.mxu0 %v2738_v52  ;;  %1676 = vmatpush1.bf16.msra.mxu1 %v2739_v53  ;;  %v2824_v52 = vld [vmem:[#allocation5 + $0x360] ss:$16 sps:$4 sm:$0xff]   ;;  %v2827_v53 = vld [vmem:[#allocation5 + $0x368] ss:$16 sps:$4 sm:$0xff]  }
  0x9d   : > { %1513 = vmatprep.subr.bf16.mxu0 %v2740_v54  ;;  %1677 = vmatprep.subr.bf16.mxu1 %v2742_v55  ;;  %v2832_v54 = vld [vmem:[#allocation5 + $0x384] ss:$16 sps:$4 sm:$0xff]   ;;  %v2835_v55 = vld [vmem:[#allocation5 + $0x38c] ss:$16 sps:$4 sm:$0xff]  }
  0xa0   : > { %1514 = vmatpush1.bf16.msra.mxu0 %v2744_v56  ;;  %1678 = vmatpush1.bf16.msra.mxu1 %v2745_v57  ;;  %v2830_v56 = vld [vmem:[#allocation5 + $0x380] ss:$16 sps:$4 sm:$0xff]   ;;  %v2833_v57 = vld [vmem:[#allocation5 + $0x388] ss:$16 sps:$4 sm:$0xff]  }
  0xa1   : > { %1515 = vmatprep.subr.bf16.mxu0 %v2746_v58  ;;  %1679 = vmatprep.subr.bf16.mxu1 %v2748_v59  ;;  %v2838_v58 = vld [vmem:[#allocation5 + $0x3a4] ss:$16 sps:$4 sm:$0xff]   ;;  %v2841_v59 = vld [vmem:[#allocation5 + $0x3ac] ss:$16 sps:$4 sm:$0xff]  }
  0xa4   : > { %1516 = vmatpush1.bf16.msra.mxu0 %v2750_v60  ;;  %1680 = vmatpush1.bf16.msra.mxu1 %v2751_v61  ;;  %v2836_v60 = vld [vmem:[#allocation5 + $0x3a0] ss:$16 sps:$4 sm:$0xff]   ;;  %v2839_v61 = vld [vmem:[#allocation5 + $0x3a8] ss:$16 sps:$4 sm:$0xff]  }
  0xa5   : > { %1517 = vmatprep.subr.bf16.mxu0 %v2752_v62  ;;  %1681 = vmatprep.subr.bf16.mxu1 %v2754_v63  ;;  %v2844_v62 = vld [vmem:[#allocation5 + $0x3c4] ss:$16 sps:$4 sm:$0xff]   ;;  %v2847_v63 = vld [vmem:[#allocation5 + $0x3cc] ss:$16 sps:$4 sm:$0xff]  }
  0xa8   : > { %1518 = vmatpush1.bf16.msra.mxu0 %v2756_v0  ;;  %1682 = vmatpush1.bf16.msra.mxu1 %v2757_v1  ;;  %v2842_v0 = vld [vmem:[#allocation5 + $0x3c0] ss:$16 sps:$4 sm:$0xff]   ;;  %v2845_v1 = vld [vmem:[#allocation5 + $0x3c8] ss:$16 sps:$4 sm:$0xff]  }
  0xa9   : > { %1528 = vmatprep.subr.bf16.mxu0 %v2760_v3  ;;  %1692 = vmatprep.subr.bf16.mxu1 %v2763_v4  ;;  %v2853_v3 = vld [vmem:[#allocation5 + $0x3ec] ss:$16 sps:$4 sm:$0xff]   ;;  %v2848_v4 = vld [vmem:[#allocation5 + $0x3e0] ss:$16 sps:$4 sm:$0xff]  }
  0xab   : > { %1520 = vmatmul.mubr.bf16.vlgmr.msra.gmra.mrb[0].mxu0 %v278_v5  ;;  %1684 = vmatmul.mubr.bf16.vlgmr.msra.gmra.mrb[0].mxu1 %v278_v5  ;;  %v2851_v5 = vld [vmem:[#allocation5 + $0x3e8] ss:$16 sps:$4 sm:$0xff]  }
  0xac   : > { %1529 = vmatpush1.bf16.msra.mxu0 %v2758_v6  ;;  %1693 = vmatpush1.bf16.msra.mxu1 %v2761_v7  ;;  %v2856_v6 = vld [vmem:[#allocation5 + $0x404] ss:$16 sps:$4 sm:$0xff]  }
  0xad   : > { %1530 = vmatprep.subr.bf16.mxu0 %v2766_v8  ;;  %1694 = vmatprep.subr.bf16.mxu1 %v2769_v9  ;;  %v273_v7 = vld [vmem:[%s3358_s23 + $0x10] sm:$0xff] }
  0xae   : > { %1560 = vmatprep.mubr.bf16.mxu0 %v281_v32  ;;  %1724 = vmatprep.mubr.bf16.mxu1 %v281_v32  ;;  %v2859_v8 = vld [vmem:[#allocation5 + $0x40c] ss:$16 sps:$4 sm:$0xff]   ;;  %v2854_v9 = vld [vmem:[#allocation5 + $0x400] ss:$16 sps:$4 sm:$0xff]  }
  0xaf   : > { %v2884_v32 = vld [vmem:[#allocation5 + $0x4a0] ss:$16 sps:$4 sm:$0xff]  }
  0xb0   : > { %1531 = vmatpush1.bf16.msra.mxu0 %v2764_v10  ;;  %1695 = vmatpush1.bf16.msra.mxu1 %v2767_v11  ;;  %v280_v10 = vpack.c.bf16 %v273_v7, %v273_v7  ;;  %v2857_v11 = vld [vmem:[#allocation5 + $0x408] ss:$16 sps:$4 sm:$0xff]   ;;  %v2949_v7 = vld [vmem:[#allocation5 + $0x5ec] ss:$16 sps:$4 sm:$0xff]  }
  0xb1   : > { %1532 = vmatprep.subr.bf16.mxu0 %v2772_v12  ;;  %1696 = vmatprep.subr.bf16.mxu1 %v2775_v13  ;;  %v2862_v12 = vld [vmem:[#allocation5 + $0x424] ss:$16 sps:$4 sm:$0xff]   ;;  %v2865_v13 = vld [vmem:[#allocation5 + $0x42c] ss:$16 sps:$4 sm:$0xff]  }
  0xb4   : > { %1533 = vmatpush1.bf16.msra.mxu0 %v2770_v14  ;;  %1697 = vmatpush1.bf16.msra.mxu1 %v2773_v15  ;;  %v276_v14 = vld [vmem:[%s3358_s23 + $0x28] sm:$0xff] }
  0xb5   : > { %1534 = vmatprep.subr.bf16.mxu0 %v2778_v16  ;;  %1698 = vmatprep.subr.bf16.mxu1 %v2781_v17  ;;  %v283_v15 = vpack.c.bf16 %v276_v14, %v276_v14  ;;  %v2860_v16 = vld [vmem:[#allocation5 + $0x420] ss:$16 sps:$4 sm:$0xff]   ;;  %v2863_v17 = vld [vmem:[#allocation5 + $0x428] ss:$16 sps:$4 sm:$0xff]  }
  0xb6   : > { %v2950_v14 = vld [vmem:[#allocation5 + $0x600] ss:$16 sps:$4 sm:$0xff]  }
  0xb8   : > { %1535 = vmatpush1.bf16.msra.mxu0 %v2776_v18  ;;  %1699 = vmatpush1.bf16.msra.mxu1 %v2779_v19  ;;  %v2868_v18 = vld [vmem:[#allocation5 + $0x444] ss:$16 sps:$4 sm:$0xff]   ;;  %v2871_v19 = vld [vmem:[#allocation5 + $0x44c] ss:$16 sps:$4 sm:$0xff]  }
  0xb9   : > { %1536 = vmatprep.subr.bf16.mxu0 %v2784_v20  ;;  %1700 = vmatprep.subr.bf16.mxu1 %v2787_v21  ;;  %v2866_v20 = vld [vmem:[#allocation5 + $0x440] ss:$16 sps:$4 sm:$0xff]   ;;  %v2869_v21 = vld [vmem:[#allocation5 + $0x448] ss:$16 sps:$4 sm:$0xff]  }
  0xbc   : > { %1537 = vmatpush1.bf16.msra.mxu0 %v2782_v22  ;;  %1701 = vmatpush1.bf16.msra.mxu1 %v2785_v23  ;;  %v2874_v22 = vld [vmem:[#allocation5 + $0x464] ss:$16 sps:$4 sm:$0xff]   ;;  %v2877_v23 = vld [vmem:[#allocation5 + $0x46c] ss:$16 sps:$4 sm:$0xff]  }
  0xbd   : > { %1538 = vmatprep.subr.bf16.mxu0 %v2790_v24  ;;  %1702 = vmatprep.subr.bf16.mxu1 %v2793_v25  ;;  %v2872_v24 = vld [vmem:[#allocation5 + $0x460] ss:$16 sps:$4 sm:$0xff]   ;;  %v2875_v25 = vld [vmem:[#allocation5 + $0x468] ss:$16 sps:$4 sm:$0xff]  }
  0xc0   : > { %1539 = vmatpush1.bf16.msra.mxu0 %v2788_v26  ;;  %1703 = vmatpush1.bf16.msra.mxu1 %v2791_v27  ;;  %v2880_v26 = vld [vmem:[#allocation5 + $0x484] ss:$16 sps:$4 sm:$0xff]   ;;  %v2883_v27 = vld [vmem:[#allocation5 + $0x48c] ss:$16 sps:$4 sm:$0xff]  }
  0xc1   : > { %1540 = vmatprep.subr.bf16.mxu0 %v2796_v28  ;;  %1704 = vmatprep.subr.bf16.mxu1 %v2799_v29  ;;  %v2878_v28 = vld [vmem:[#allocation5 + $0x480] ss:$16 sps:$4 sm:$0xff]   ;;  %v2881_v29 = vld [vmem:[#allocation5 + $0x488] ss:$16 sps:$4 sm:$0xff]  }
  0xc4   : > { %1541 = vmatpush1.bf16.msra.mxu0 %v2794_v31  ;;  %1705 = vmatpush1.bf16.msra.mxu1 %v2797_v33  ;;  %v2889_v31 = vld [vmem:[#allocation5 + $0x4ac] ss:$16 sps:$4 sm:$0xff]   ;;  %v2887_v33 = vld [vmem:[#allocation5 + $0x4a8] ss:$16 sps:$4 sm:$0xff]  }
  0xc5   : > { %1542 = vmatprep.subr.bf16.mxu0 %v2802_v34  ;;  %1706 = vmatprep.subr.bf16.mxu1 %v2805_v35  ;;  %v2892_v34 = vld [vmem:[#allocation5 + $0x4c4] ss:$16 sps:$4 sm:$0xff]   ;;  %v2895_v35 = vld [vmem:[#allocation5 + $0x4cc] ss:$16 sps:$4 sm:$0xff]  }
  0xc8   : > { %1543 = vmatpush1.bf16.msra.mxu0 %v2800_v36  ;;  %1707 = vmatpush1.bf16.msra.mxu1 %v2803_v37  ;;  %v2890_v36 = vld [vmem:[#allocation5 + $0x4c0] ss:$16 sps:$4 sm:$0xff]   ;;  %v2893_v37 = vld [vmem:[#allocation5 + $0x4c8] ss:$16 sps:$4 sm:$0xff]  }
  0xc9   : > { %1544 = vmatprep.subr.bf16.mxu0 %v2808_v38  ;;  %1708 = vmatprep.subr.bf16.mxu1 %v2811_v39  ;;  %v2898_v38 = vld [vmem:[#allocation5 + $0x4e4] ss:$16 sps:$4 sm:$0xff]   ;;  %v2901_v39 = vld [vmem:[#allocation5 + $0x4ec] ss:$16 sps:$4 sm:$0xff]  }
  0xcc   : > { %1545 = vmatpush1.bf16.msra.mxu0 %v2806_v40  ;;  %1709 = vmatpush1.bf16.msra.mxu1 %v2809_v41  ;;  %v2896_v40 = vld [vmem:[#allocation5 + $0x4e0] ss:$16 sps:$4 sm:$0xff]   ;;  %v2899_v41 = vld [vmem:[#allocation5 + $0x4e8] ss:$16 sps:$4 sm:$0xff]  }
  0xcd   : > { %1546 = vmatprep.subr.bf16.mxu0 %v2814_v42  ;;  %1710 = vmatprep.subr.bf16.mxu1 %v2817_v43  ;;  %v2904_v42 = vld [vmem:[#allocation5 + $0x504] ss:$16 sps:$4 sm:$0xff]   ;;  %v2907_v43 = vld [vmem:[#allocation5 + $0x50c] ss:$16 sps:$4 sm:$0xff]  }
  0xd0   : > { %1547 = vmatpush1.bf16.msra.mxu0 %v2812_v44  ;;  %1711 = vmatpush1.bf16.msra.mxu1 %v2815_v45  ;;  %v2902_v44 = vld [vmem:[#allocation5 + $0x500] ss:$16 sps:$4 sm:$0xff]   ;;  %v2905_v45 = vld [vmem:[#allocation5 + $0x508] ss:$16 sps:$4 sm:$0xff]  }
  0xd1   : > { %1548 = vmatprep.subr.bf16.mxu0 %v2820_v46  ;;  %1712 = vmatprep.subr.bf16.mxu1 %v2823_v47  ;;  %v2910_v46 = vld [vmem:[#allocation5 + $0x524] ss:$16 sps:$4 sm:$0xff]   ;;  %v2913_v47 = vld [vmem:[#allocation5 + $0x52c] ss:$16 sps:$4 sm:$0xff]  }
  0xd4   : > { %1549 = vmatpush1.bf16.msra.mxu0 %v2818_v48  ;;  %1713 = vmatpush1.bf16.msra.mxu1 %v2821_v49  ;;  %v2908_v48 = vld [vmem:[#allocation5 + $0x520] ss:$16 sps:$4 sm:$0xff]   ;;  %v2911_v49 = vld [vmem:[#allocation5 + $0x528] ss:$16 sps:$4 sm:$0xff]  }
  0xd5   : > { %1550 = vmatprep.subr.bf16.mxu0 %v2826_v50  ;;  %1714 = vmatprep.subr.bf16.mxu1 %v2829_v51  ;;  %v2916_v50 = vld [vmem:[#allocation5 + $0x544] ss:$16 sps:$4 sm:$0xff]   ;;  %v2919_v51 = vld [vmem:[#allocation5 + $0x54c] ss:$16 sps:$4 sm:$0xff]  }
  0xd8   : > { %1551 = vmatpush1.bf16.msra.mxu0 %v2824_v52  ;;  %1715 = vmatpush1.bf16.msra.mxu1 %v2827_v53  ;;  %v2914_v52 = vld [vmem:[#allocation5 + $0x540] ss:$16 sps:$4 sm:$0xff]   ;;  %v2917_v53 = vld [vmem:[#allocation5 + $0x548] ss:$16 sps:$4 sm:$0xff]  }
  0xd9   : > { %1552 = vmatprep.subr.bf16.mxu0 %v2832_v54  ;;  %1716 = vmatprep.subr.bf16.mxu1 %v2835_v55  ;;  %v2922_v54 = vld [vmem:[#allocation5 + $0x564] ss:$16 sps:$4 sm:$0xff]   ;;  %v2925_v55 = vld [vmem:[#allocation5 + $0x56c] ss:$16 sps:$4 sm:$0xff]  }
  0xdc   : > { %1553 = vmatpush1.bf16.msra.mxu0 %v2830_v56  ;;  %1717 = vmatpush1.bf16.msra.mxu1 %v2833_v57  ;;  %v2920_v56 = vld [vmem:[#allocation5 + $0x560] ss:$16 sps:$4 sm:$0xff]   ;;  %v2923_v57 = vld [vmem:[#allocation5 + $0x568] ss:$16 sps:$4 sm:$0xff]  }
  0xdd   : > { %1554 = vmatprep.subr.bf16.mxu0 %v2838_v58  ;;  %1718 = vmatprep.subr.bf16.mxu1 %v2841_v59  ;;  %v2928_v58 = vld [vmem:[#allocation5 + $0x584] ss:$16 sps:$4 sm:$0xff]   ;;  %v2931_v59 = vld [vmem:[#allocation5 + $0x58c] ss:$16 sps:$4 sm:$0xff]  }
  0xe0   : > { %1555 = vmatpush1.bf16.msra.mxu0 %v2836_v60  ;;  %1719 = vmatpush1.bf16.msra.mxu1 %v2839_v61  ;;  %v2926_v60 = vld [vmem:[#allocation5 + $0x580] ss:$16 sps:$4 sm:$0xff]   ;;  %v2929_v61 = vld [vmem:[#allocation5 + $0x588] ss:$16 sps:$4 sm:$0xff]  }
  0xe1   : > { %1556 = vmatprep.subr.bf16.mxu0 %v2844_v62  ;;  %1720 = vmatprep.subr.bf16.mxu1 %v2847_v63  ;;  %v2934_v62 = vld [vmem:[#allocation5 + $0x5a4] ss:$16 sps:$4 sm:$0xff]   ;;  %v2937_v63 = vld [vmem:[#allocation5 + $0x5ac] ss:$16 sps:$4 sm:$0xff]  }
  0xe4   : > { %1557 = vmatpush1.bf16.msra.mxu0 %v2842_v0  ;;  %1721 = vmatpush1.bf16.msra.mxu1 %v2845_v1  ;;  %v2932_v0 = vld [vmem:[#allocation5 + $0x5a0] ss:$16 sps:$4 sm:$0xff]   ;;  %v2935_v1 = vld [vmem:[#allocation5 + $0x5a8] ss:$16 sps:$4 sm:$0xff]  }
  0xe5   : > { %1558 = vmatprep.subr.bf16.mxu0 %v2850_v2  ;;  %1722 = vmatprep.subr.bf16.mxu1 %v2853_v3  ;;  %v2940_v2 = vld [vmem:[#allocation5 + $0x5c4] ss:$16 sps:$4 sm:$0xff]   ;;  %v2943_v3 = vld [vmem:[#allocation5 + $0x5cc] ss:$16 sps:$4 sm:$0xff]  }
  0xe8   : > { %1559 = vmatpush1.bf16.msra.mxu0 %v2848_v4  ;;  %1723 = vmatpush1.bf16.msra.mxu1 %v2851_v5  ;;  %v2938_v4 = vld [vmem:[#allocation5 + $0x5c0] ss:$16 sps:$4 sm:$0xff]   ;;  %v2941_v5 = vld [vmem:[#allocation5 + $0x5c8] ss:$16 sps:$4 sm:$0xff]  }
  0xe9   : > { %1569 = vmatprep.subr.bf16.mxu0 %v2856_v6  ;;  %1733 = vmatprep.subr.bf16.mxu1 %v2859_v8  ;;  %v2946_v6 = vld [vmem:[#allocation5 + $0x5e4] ss:$16 sps:$4 sm:$0xff]   ;;  %v2944_v8 = vld [vmem:[#allocation5 + $0x5e0] ss:$16 sps:$4 sm:$0xff]  }
  0xeb   : > { %1561 = vmatmul.mubr.bf16.vlgmr.msra.gmra.mrb[0].mxu0 %v280_v10  ;;  %1725 = vmatmul.mubr.bf16.vlgmr.msra.gmra.mrb[0].mxu1 %v280_v10  ;;  %v275_v10 = vld [vmem:[%s3358_s23 + $0x20] sm:$0xff] }
  0xec   : > { %1570 = vmatpush1.bf16.msra.mxu0 %v2854_v9  ;;  %1734 = vmatpush1.bf16.msra.mxu1 %v2857_v11  ;;  %v2947_v9 = vld [vmem:[#allocation5 + $0x5e8] ss:$16 sps:$4 sm:$0xff]   ;;  %v2952_v11 = vld [vmem:[#allocation5 + $0x604] ss:$16 sps:$4 sm:$0xff]  }
  0xed   : > { %1571 = vmatprep.subr.bf16.mxu0 %v2862_v12  ;;  %1735 = vmatprep.subr.bf16.mxu1 %v2865_v13  ;;  %v2955_v12 = vld [vmem:[#allocation5 + $0x60c] ss:$16 sps:$4 sm:$0xff]   ;;  %v282_v13 = vpack.c.bf16 %v275_v10, %v275_v10 }
  0xee   : > { %1601 = vmatprep.mubr.bf16.mxu0 %v283_v15  ;;  %1765 = vmatprep.mubr.bf16.mxu1 %v283_v15  ;;  %v2953_v15 = vld [vmem:[#allocation5 + $0x608] ss:$16 sps:$4 sm:$0xff]  }
  0xf0   : > { %1572 = vmatpush1.bf16.msra.mxu0 %v2860_v16  ;;  %1736 = vmatpush1.bf16.msra.mxu1 %v2863_v17  ;;  %v2956_v16 = vld [vmem:[#allocation7 + $0x40] sm:$0xff]  }
  0xf1   : > { %1573 = vmatprep.subr.bf16.mxu0 %v2868_v18  ;;  %1737 = vmatprep.subr.bf16.mxu1 %v2871_v19  ;;  %v2957_v17 = vld [vmem:[#allocation7 + $0xc0] sm:$0xff]   ;;  %v3153_v18 = vmov 0  }
  0xf2   : > { %v277_v19 = vld [vmem:[%s3358_s23 + $0x30] sm:$0xff]  ;;  %s3080_s23 = scalar_lea.vmem %s3079_s17, 256 }
  0xf3   : > { %p3082_p9 = scmp.lt.s32.totalorder %s3080_s23, %s3074_s15 }
  0xf4   : > { %1574 = vmatpush1.bf16.msra.mxu0 %v2866_v20  ;;  %1738 = vmatpush1.bf16.msra.mxu1 %v2869_v21  ;;  %v284_v20 = vpack.c.bf16 %v277_v19, %v277_v19  ;;  %v2958_v21 = vld [vmem:[#allocation7] sm:$0xff]  }
  0xf5   : > { %1575 = vmatprep.subr.bf16.mxu0 %v2874_v22  ;;  %1739 = vmatprep.subr.bf16.mxu1 %v2877_v23  ;;  %v2959_v22 = vld [vmem:[#allocation7 + $0x80] sm:$0xff]   ;;  %v2960_v23 = vld [vmem:[#allocation7 + $0x48] sm:$0xff]   ;;  %p3083_p12 = por %p3082_p9, %p3081_p5 }
  0xf7   : > { %p3084_p2 = pnand %p3083_p12, %p3077_p3 }
  0xf8   : > { %1576 = vmatpush1.bf16.msra.mxu0 %v2872_v24  ;;  %1740 = vmatpush1.bf16.msra.mxu1 %v2875_v25  ;;  %v2961_v24 = vld [vmem:[#allocation7 + $0xc8] sm:$0xff]  }
  0xf9   : > { %1577 = vmatprep.subr.bf16.mxu0 %v2880_v26  ;;  %1741 = vmatprep.subr.bf16.mxu1 %v2883_v27  ;;  %v2962_v25 = vld [vmem:[#allocation7 + $0x8] sm:$0xff]   ;;  %v2964_v27 = vld [vmem:[#allocation7 + $0x50] sm:$0xff]  }
  0xfa   : > { %v2963_v26 = vld [vmem:[#allocation7 + $0x88] sm:$0xff]  }
  0xfc   : > { %1578 = vmatpush1.bf16.msra.mxu0 %v2878_v28  ;;  %1742 = vmatpush1.bf16.msra.mxu1 %v2881_v29  ;;  %v2965_v28 = vld [vmem:[#allocation7 + $0xd0] sm:$0xff]  }
  0xfd   : > { %1579 = vmatprep.subr.bf16.mxu0 %v2886_v30  ;;  %1743 = vmatprep.subr.bf16.mxu1 %v2889_v31  ;;  %v2966_v29 = vld [vmem:[#allocation7 + $0x10] sm:$0xff]   ;;  %v2968_v31 = vld [vmem:[#allocation7 + $0x58] sm:$0xff]  }
  0xfe   : > { %v2967_v30 = vld [vmem:[#allocation7 + $0x90] sm:$0xff]  }
 0x100   : > { %1580 = vmatpush1.bf16.msra.mxu0 %v2884_v32  ;;  %1744 = vmatpush1.bf16.msra.mxu1 %v2887_v33  ;;  %v2969_v32 = vld [vmem:[#allocation7 + $0xd8] sm:$0xff]  }
 0x101   : > { %1581 = vmatprep.subr.bf16.mxu0 %v2892_v34  ;;  %1745 = vmatprep.subr.bf16.mxu1 %v2895_v35  ;;  %v2970_v33 = vld [vmem:[#allocation7 + $0x18] sm:$0xff]   ;;  %v2972_v35 = vld [vmem:[#allocation7 + $0x60] sm:$0xff]  }
 0x102   : > { %v2971_v34 = vld [vmem:[#allocation7 + $0x98] sm:$0xff]  }
 0x104   : > { %1582 = vmatpush1.bf16.msra.mxu0 %v2890_v36  ;;  %1746 = vmatpush1.bf16.msra.mxu1 %v2893_v37  ;;  %v2973_v36 = vld [vmem:[#allocation7 + $0xe0] sm:$0xff]  }
 0x105   : > { %1583 = vmatprep.subr.bf16.mxu0 %v2898_v38  ;;  %1747 = vmatprep.subr.bf16.mxu1 %v2901_v39  ;;  %v2974_v37 = vld [vmem:[#allocation7 + $0x20] sm:$0xff]   ;;  %v2976_v39 = vld [vmem:[#allocation7 + $0x68] sm:$0xff]  }
 0x106   : > { %v2975_v38 = vld [vmem:[#allocation7 + $0xa0] sm:$0xff]  }
 0x108   : > { %1584 = vmatpush1.bf16.msra.mxu0 %v2896_v40  ;;  %1748 = vmatpush1.bf16.msra.mxu1 %v2899_v41  ;;  %v2977_v40 = vld [vmem:[#allocation7 + $0xe8] sm:$0xff]  }
 0x109   : > { %1585 = vmatprep.subr.bf16.mxu0 %v2904_v42  ;;  %1749 = vmatprep.subr.bf16.mxu1 %v2907_v43  ;;  %v2978_v41 = vld [vmem:[#allocation7 + $0x28] sm:$0xff]   ;;  %v2980_v43 = vld [vmem:[#allocation7 + $0x70] sm:$0xff]  }
 0x10a   : > { %v2979_v42 = vld [vmem:[#allocation7 + $0xa8] sm:$0xff]  }
 0x10c   : > { %1586 = vmatpush1.bf16.msra.mxu0 %v2902_v44  ;;  %1750 = vmatpush1.bf16.msra.mxu1 %v2905_v45  ;;  %v2981_v44 = vld [vmem:[#allocation7 + $0xf0] sm:$0xff]  }
 0x10d   : > { %1587 = vmatprep.subr.bf16.mxu0 %v2910_v46  ;;  %1751 = vmatprep.subr.bf16.mxu1 %v2913_v47  ;;  %v2982_v45 = vld [vmem:[#allocation7 + $0x30] sm:$0xff]   ;;  %v2984_v47 = vld [vmem:[#allocation7 + $0x78] sm:$0xff]  }
 0x10e   : > { %v2983_v46 = vld [vmem:[#allocation7 + $0xb0] sm:$0xff]  }
 0x110   : > { %1588 = vmatpush1.bf16.msra.mxu0 %v2908_v48  ;;  %1752 = vmatpush1.bf16.msra.mxu1 %v2911_v49  ;;  %v2985_v48 = vld [vmem:[#allocation7 + $0xf8] sm:$0xff]  }
 0x111   : > { %1589 = vmatprep.subr.bf16.mxu0 %v2916_v50  ;;  %1753 = vmatprep.subr.bf16.mxu1 %v2919_v51  ;;  %v2986_v49 = vld [vmem:[#allocation7 + $0x38] sm:$0xff]   ;;  %v483_v51 = vlaneseq }
 0x112   : > { %v2987_v50 = vld [vmem:[#allocation7 + $0xb8] sm:$0xff]  }
 0x114   : > { %1590 = vmatpush1.bf16.msra.mxu0 %v2914_v52  ;;  %1754 = vmatpush1.bf16.msra.mxu1 %v2917_v53  ;;  %v484_v52 = vshrl.u32 %v483_v51, 7 }
 0x115   : > { %1591 = vmatprep.subr.bf16.mxu0 %v2922_v54  ;;  %1755 = vmatprep.subr.bf16.mxu1 %v2925_v55  ;;  %v481_v55 = vld [vmem:[%s3432_s2] sm:$0xf] }
 0x116   : > { %v485_v53 = vsub.s32 0, %v484_v52  ;;  %v493_v54 = vsub.s32 2, %v484_v52 }
 0x118   : > { %1592 = vmatpush1.bf16.msra.mxu0 %v2920_v56  ;;  %1756 = vmatpush1.bf16.msra.mxu1 %v2923_v57  ;;  %v489_v56 = vsub.s32 1, %v484_v52  ;;  %v497_v57 = vsub.s32 3, %v484_v52 }
 0x119   : > { %1593 = vmatprep.subr.bf16.mxu0 %v2928_v58  ;;  %1757 = vmatprep.subr.bf16.mxu1 %v2931_v59  ;;  %v486_v58 = vrot.slane %v481_v55, %v485_v53  ;;  %v494_v59 = vrot.slane %v481_v55, %v493_v54 }
 0x11c   : > { %1594 = vmatpush1.bf16.msra.mxu0 %v2926_v60  ;;  %1758 = vmatpush1.bf16.msra.mxu1 %v2929_v61  ;;  %v490_v60 = vrot.slane %v481_v55, %v489_v56  ;;  %v498_v61 = vrot.slane %v481_v55, %v497_v57 }
 0x11d   : > { %1595 = vmatprep.subr.bf16.mxu0 %v2934_v62  ;;  %1759 = vmatprep.subr.bf16.mxu1 %v2937_v63 }
 0x120   : > { %1596 = vmatpush1.bf16.msra.mxu0 %v2932_v0  ;;  %1760 = vmatpush1.bf16.msra.mxu1 %v2935_v1 }
 0x121   : > { %1597 = vmatprep.subr.bf16.mxu0 %v2940_v2  ;;  %1761 = vmatprep.subr.bf16.mxu1 %v2943_v3 }
 0x124   : > { %1598 = vmatpush1.bf16.msra.mxu0 %v2938_v4  ;;  %1762 = vmatpush1.bf16.msra.mxu1 %v2941_v5 }
 0x125   : > { %1599 = vmatprep.subr.bf16.mxu0 %v2946_v6  ;;  %1763 = vmatprep.subr.bf16.mxu1 %v2949_v7 }
 0x128   : > { %1600 = vmatpush1.bf16.msra.mxu0 %v2944_v8  ;;  %1764 = vmatpush1.bf16.msra.mxu1 %v2947_v9 }
 0x129   : > { %1610 = vmatprep.subr.bf16.mxu0 %v2952_v11  ;;  %1774 = vmatprep.subr.bf16.mxu1 %v2955_v12 }
 0x12b   : > { %1602 = vmatmul.mubr.bf16.vlgmr.msra.gmra.mrb[0].mxu0 %v282_v13  ;;  %1766 = vmatmul.mubr.bf16.vlgmr.msra.gmra.mrb[0].mxu1 %v282_v13 }
 0x12c   : > { %1611 = vmatpush1.bf16.msra.mxu0 %v2950_v14  ;;  %1775 = vmatpush1.bf16.msra.mxu1 %v2953_v15 }
 0x12d   : > { %1642 = vmatprep.mubr.bf16.mxu0 %v3153_v18  ;;  %1806 = vmatprep.mubr.bf16.mxu1 %v3153_v18 }
 0x12e   : > { %2515 = vmatprep.subr.bf16.mxu0 %v2956_v16  ;;  %2537 = vmatprep.subr.bf16.mxu1 %v2957_v17 }
 0x137   : > { %2476 = vmatmul.mubr.msk.bf16.vlgmr.msra.gmra.mrb[0].mxu0 %vm1483_vm0, %v284_v20  ;;  %2477 = vmatmul.mubr.msk.bf16.vlgmr.msra.gmra.mrb[0].mxu1 %vm1483_vm0, %v284_v20  ;;  %v2478_v20 = vld [vmem:[%s3434_s4] ss:$0 sm:$0xff] }
 0x138   : > { %2516 = vmatpush3.bf16.msra.mxu0 %v2958_v21  ;;  %2538 = vmatpush3.bf16.msra.mxu1 %v2959_v22 }
 0x139   : > { %2517 = vmatprep.subr.bf16.mxu0 %v2960_v23  ;;  %2539 = vmatprep.subr.bf16.mxu1 %v2961_v24 }
 0x13c   : > { %2518 = vmatpush3.bf16.msra.mxu0 %v2962_v25  ;;  %2540 = vmatpush3.bf16.msra.mxu1 %v2963_v26 }
 0x13d   : > { %2519 = vmatprep.subr.bf16.mxu0 %v2964_v27  ;;  %2541 = vmatprep.subr.bf16.mxu1 %v2965_v28 }
 0x140   : > { %2520 = vmatpush3.bf16.msra.mxu0 %v2966_v29  ;;  %2542 = vmatpush3.bf16.msra.mxu1 %v2967_v30 }
 0x141   : > { %2521 = vmatprep.subr.bf16.mxu0 %v2968_v31  ;;  %2543 = vmatprep.subr.bf16.mxu1 %v2969_v32 }
 0x144   : > { %2522 = vmatpush3.bf16.msra.mxu0 %v2970_v33  ;;  %2544 = vmatpush3.bf16.msra.mxu1 %v2971_v34 }
 0x145   : > { %2523 = vmatprep.subr.bf16.mxu0 %v2972_v35  ;;  %2545 = vmatprep.subr.bf16.mxu1 %v2973_v36 }
 0x148   : > { %2524 = vmatpush3.bf16.msra.mxu0 %v2974_v37  ;;  %2546 = vmatpush3.bf16.msra.mxu1 %v2975_v38 }
 0x149   : > { %2525 = vmatprep.subr.bf16.mxu0 %v2976_v39  ;;  %2547 = vmatprep.subr.bf16.mxu1 %v2977_v40 }
 0x14c   : > { %2526 = vmatpush3.bf16.msra.mxu0 %v2978_v41  ;;  %2548 = vmatpush3.bf16.msra.mxu1 %v2979_v42 }
 0x14d   : > { %2527 = vmatprep.subr.bf16.mxu0 %v2980_v43  ;;  %2549 = vmatprep.subr.bf16.mxu1 %v2981_v44 }
 0x150   : > { %2528 = vmatpush3.bf16.msra.mxu0 %v2982_v45  ;;  %2550 = vmatpush3.bf16.msra.mxu1 %v2983_v46 }
 0x151   : > { %2529 = vmatprep.subr.bf16.mxu0 %v2984_v47  ;;  %2551 = vmatprep.subr.bf16.mxu1 %v2985_v48 }
 0x154   : > { %2530 = vmatpush3.bf16.msra.mxu0 %v2986_v49  ;;  %2552 = vmatpush3.bf16.msra.mxu1 %v2987_v50 }
 0x20a   : > { %v1644_v62 = vpop.f32.mrb[0].mxu0  ;;  %v1808_v63 = vpop.f32.mrb[0].mxu1 }
 0x20b   : > { %v2559_v0 = vadd.f32 %v1644_v62, %v486_v58  ;;  %v2561_v1 = vadd.f32 %v1808_v63, %v494_v59  ;;  %v1646_v2 = vpop.f32.mrb[1].mxu0  ;;  %v1810_v3 = vpop.f32.mrb[1].mxu1 }
 0x20c   : > { %v2560_v4 = vadd.f32 %v1646_v2, %v490_v60  ;;  %v2562_v5 = vadd.f32 %v1810_v3, %v498_v61  ;;  %v1648_v6 = vpop.f32.mrb[2].mxu0  ;;  %v1812_v7 = vpop.f32.mrb[2].mxu1 }
 0x20d   : > { %v1815_v8 = vmax.f32 %v2559_v0, 0.0  ;;  %v1817_v9 = vmax.f32 %v2561_v1, 0.0  ;;  %v1649_v10 = vpop.f32.mrb[3].mxu0  ;;  %v1813_v11 = vpop.f32.mrb[3].mxu1 }
 0x20e   : > { %v1816_v12 = vmax.f32 %v2560_v4, 0.0  ;;  %v1818_v13 = vmax.f32 %v2562_v5, 0.0 }
 0x20f   : > { %v1819_v16 = vpack.c.bf16 %v1815_v8, %v1815_v8  ;;  %v1821_v17 = vpack.c.bf16 %v1817_v9, %v1817_v9 }
 0x210   : > { %v1820_v14 = vpack.c.bf16 %v1816_v12, %v1816_v12  ;;  %v1822_v15 = vpack.c.bf16 %v1818_v13, %v1818_v13 }
 0x212   : > { %2118 = vmatprep.mubr.bf16.mxu0 %v1820_v14  ;;  %2158 = vmatprep.mubr.bf16.mxu1 %v1822_v15 }
 0x213   : > { %2119 = vmatmul.mubr.bf16.vlgmr.msra.gmra.mrb[4].mxu0 %v1819_v16  ;;  %2159 = vmatmul.mubr.bf16.vlgmr.msra.gmra.mrb[4].mxu1 %v1821_v17 }
 0x2e6   : > { %v2531_v18 = vpop.f32.mrb[4].mxu0  ;;  %v2553_v19 = vpop.f32.mrb[4].mxu1 }
 0x2e7   : > { %v2532_v21 = vpop.f32.mrb[5].mxu0  ;;  %v2554_v22 = vpop.f32.mrb[5].mxu1 }
 0x2e8   : > { %v2533_v23 = vadd.f32 %v2532_v21, %v2531_v18  ;;  %v2555_v24 = vadd.f32 %v2554_v22, %v2553_v19  ;;  %v2534_v25 = vpop.f32.mrb[6].mxu0  ;;  %v2556_v26 = vpop.f32.mrb[6].mxu1 }
 0x2e9   : > { %v2535_v27 = vpop.f32.mrb[7].mxu0  ;;  %v2557_v28 = vpop.f32.mrb[7].mxu1 }
 0x2ea   : > { %v2121_v29 = vadd.f32 %v2533_v23, %v2478_v20 }
 0x2ec   : > { %v2161_v30 = vadd.f32 %v2555_v24, %v2121_v29 }
 0x2ee   : > { %2166 = vst [vmem:[%s269_s6] sm:$0xff] %v2161_v30 }
 0x2ef   : > { %3087 = shalt.err (!%p3084_p2)
}
 0x2f0   : > { %s3088_s14 = scalar_lea.hbm %s3386_s10, 128  ;;  %s3092_s8 = scalar_lea.hbm %s3435_s5, 256 }
 0x2f1   : > { %p3089_p13 = scmp.ne.s32.totalorder %s3386_s10, %s3088_s14  ;;  %p3093_p4 = scmp.lt.u32.totalorder %s3386_s10, %s3435_s5 }
 0x2f2   : > { %p3094_p7 = scmp.lt.u32.totalorder %s3092_s8, %s3088_s14  ;;  %p3096_p11 = scmp.lt.u32.totalorder %s3088_s14, %s3386_s10 }
 0x2f3   : > { %p3090_p6 = pnand %p3089_p13, %p3449_p0 }
 0x2f4   : > { %p3095_p8 = por %p3094_p7, %p3093_p4 }
 0x2f5   : > { %p3091_p10 = pneg %p3090_p6 }
 0x2f6   : > { %p3097_p1 = por %p3096_p11, %p3095_p8 }
 0x2f8   : > { %p3098_p3 = pnand %p3097_p1, %p3091_p10 }
 0x2fa   : > { %3101 = shalt.err (!%p3098_p3)
}
 0x2fb   : > { %2600 = dma.vmem_to_hbm [thread:$0]  (%p3449_p0), %s3388_s9, 128, %s3386_s10, %s2168_s28  }
 0x2fc PF: > { %s2193_s13 = sand.u32 1, %s3132_s18   ;;  %p3450_p5 = scmp.ne.s32.totalorder %s3440_s25, 0 }
 0x2fd   : > { %p3451_p9 = scmp.ge.s32.totalorder %s3144_s21, 2  ;;  %s2194_s6 = scalar_lea.sflag [#allocation4], %s2193_s13 }
 0x2ff   : > { %p2614_p12 = pnand %p3451_p9, %p3450_p5 }
 0x301   : > { %3127 = dma.done.wait (!%p2614_p12), %s2194_s6, 128  }
 0x302   : > { %3129 = vsyncadd (!%p2614_p12), %s2194_s6, 4294967168  ;;  %p19_p2 = scmp.ge.s32.totalorder %s3295_s16, 4   ;;  %s3452_s18 = smov %s3136_s19 }
 0x303   : > { %s3453_s19 = smov %s3140_s20  ;;  %s3454_s20 = smov %s3304_s27 }
 0x304   : > { %s3455_s21 = smov %s3295_s16  ;;  %21 = sbr.rel (!%p19_p2) target bundleno = 6 (0x6), region = 93 }
 0x30b   :  { %2199 = vsyncpa [#allocation3], 1 }
 0x30c   :  { %2201 = vsyncpa [#allocation3 + $0x1], 1 }
 0x30d   :  { %2202 = vsyncpa [#allocation6], 1 }
 0x30e   :  { %2203 = vsyncpa [#allocation4], 1 }
 0x30f   :  { %2205 = vsyncpa [#allocation4 + $0x1], 1 }

</bundles_post_ra>
